<compile_context>
chip_gen: v5e
topology: v5e:2x2
jax: 0.10.0
libtpu: 0.0.40
codegen_flags: <defaults>
</compile_context>

<pallas_src>
import jax
import jax.numpy as jnp
from jax.experimental import pallas as pl
from jax.experimental.pallas import tpu as pltpu


def rope_kernel(x_ref, cos_ref, sin_ref, o_ref):
    # x_ref block: (1, tT, D) — one (batch, seq-tile) per grid step.
    x = x_ref[0]                       # (tT, D)  f32
    half = x.shape[-1] // 2            # static at trace time
    cos = cos_ref[...]                 # (tT, half)
    sin = sin_ref[...]                 # (tT, half)

    x_real = x[:, :half]               # (tT, half)
    x_imag = x[:, half:]               # (tT, half)

    y_real = x_real * cos - x_imag * sin
    y_imag = x_real * sin + x_imag * cos

    # Single full-width (tT, D) store — lane-dense output.
    o_ref[0] = jnp.concatenate([y_real, y_imag], axis=-1)


def rotary_positional_encoding(x, positions_sin, positions_cos, *, tile_t=256):
    """RoPE forward.

    x:             (..., T, D) float32, D even.
    positions_sin: (max_length, D // 2)  precomputed sin table (module buffer).
    positions_cos: (max_length, D // 2)  precomputed cos table (module buffer).
    """
    orig_shape = x.shape
    T, D = orig_shape[-2], orig_shape[-1]
    assert D % 2 == 0
    half = D // 2

    # Flatten leading dims to a single batch axis (module supports any rank).
    xb = x.reshape(-1, T, D)
    B = xb.shape[0]

    # Module forward uses positions_{sin,cos}[:T].
    cos = positions_cos[:T]
    sin = positions_sin[:T]

    # Sequence tile: multiple of 8 (sublane rule) or the full T.
    tT = tile_t if (tile_t <= T and T % tile_t == 0 and tile_t % 8 == 0) else T
    grid = (B, T // tT)

    out = pl.pallas_call(
        rope_kernel,
        out_shape=jax.ShapeDtypeStruct((B, T, D), x.dtype),
        grid=grid,
        in_specs=[
            pl.BlockSpec((1, tT, D), lambda b, t: (b, t, 0)),     # x tile
            pl.BlockSpec((tT, half), lambda b, t: (t, 0)),        # cos tile
            pl.BlockSpec((tT, half), lambda b, t: (t, 0)),        # sin tile
        ],
        out_specs=pl.BlockSpec((1, tT, D), lambda b, t: (b, t, 0)),
        compiler_params=pltpu.CompilerParams(
            dimension_semantics=("parallel", "parallel")),
        cost_estimate=pl.CostEstimate(
            flops=6 * B * T * half,            # 4 mul + 2 add per (t, half)
            transcendentals=0,
            bytes_accessed=4 * (2 * B * T * D + 2 * B * T * half)),
    )(xb, cos, sin)

    return out.reshape(orig_shape)


def rope_ref(x, positions_sin, positions_cos):
    """Pure-JAX reference mirroring the PyTorch forward."""
    T = x.shape[-2]
    half = x.shape[-1] // 2
    cos = positions_cos[:T]
    sin = positions_sin[:T]
    x_real = x[..., :half]
    x_imag = x[..., half:]
    y_real = x_real * cos - x_imag * sin
    y_imag = x_real * sin + x_imag * cos
    return jnp.concatenate([y_real, y_imag], axis=-1)


def make_rope_buffers(dim, max_length):
    """Mirrors the module's __init__ (register_buffer contents)."""
    positions = jnp.arange(max_length, dtype=jnp.float32)              # (L,)
    theta = 1.0 / (10000.0 ** (jnp.arange(0, dim, 2, dtype=jnp.float32) / dim))
    positions_theta = positions[:, None] * theta[None, :]              # (L, D/2)
    return jnp.sin(positions_theta), jnp.cos(positions_theta)


if __name__ == "__main__":
    B, T, D = 2, 16, 32          # small shapes; D even as the module requires
    max_length = 32

    key = jax.random.PRNGKey(0)
    x = jax.random.normal(key, (B, T, D), dtype=jnp.float32)

    positions_sin, positions_cos = make_rope_buffers(D, max_length)

    # tile_t=8 so the demo actually exercises the (batch, seq-tile) grid.
    out = rotary_positional_encoding(x, positions_sin, positions_cos, tile_t=8)
    out = jax.block_until_ready(out)

    ref = rope_ref(x, positions_sin, positions_cos)
    assert out.shape == (B, T, D)
    assert jnp.allclose(out, ref, atol=1e-5, rtol=1e-5)

    print("KERNEL_OK")
</pallas_src>

<mosaic_0001>
module attributes {stable_mosaic.version = 11 : i64} {
  func.func @rope_kernel(%arg0: i32, %arg1: i32, %arg2: memref<1x8x32xf32, #tpu.memory_space<vmem>>, %arg3: memref<8x16xf32, #tpu.memory_space<vmem>>, %arg4: memref<8x16xf32, #tpu.memory_space<vmem>>, %arg5: memref<1x8x32xf32, #tpu.memory_space<vmem>>) attributes {dimension_semantics = [#tpu.dimension_semantics<parallel>, #tpu.dimension_semantics<parallel>], iteration_bounds = array<i64: 2, 2>, scalar_prefetch = 0 : i64, scratch_operands = 0 : i64, tpu.core_type = #tpu.core_type<tc>, window_params = [{transform_indices = @transform_0, window_bounds = array<i64: 1, 8, 32>}, {transform_indices = @transform_1, window_bounds = array<i64: 8, 16>}, {transform_indices = @transform_2, window_bounds = array<i64: 8, 16>}, {transform_indices = @transform_3, window_bounds = array<i64: 1, 8, 32>}]} {
    %c0 = arith.constant 0 : index
    %c0_0 = arith.constant 0 : index
    %c0_1 = arith.constant 0 : index
    %0 = vector.load %arg2[%c0, %c0_0, %c0_1] : memref<1x8x32xf32, #tpu.memory_space<vmem>>, vector<1x8x32xf32>
    %1 = vector.shape_cast %0 : vector<1x8x32xf32> to vector<8x32xf32>
    %c0_2 = arith.constant 0 : index
    %c0_3 = arith.constant 0 : index
    %2 = vector.load %arg3[%c0_2, %c0_3] : memref<8x16xf32, #tpu.memory_space<vmem>>, vector<8x16xf32>
    %c0_4 = arith.constant 0 : index
    %c0_5 = arith.constant 0 : index
    %3 = vector.load %arg4[%c0_4, %c0_5] : memref<8x16xf32, #tpu.memory_space<vmem>>, vector<8x16xf32>
    %4 = vector.extract_strided_slice %1 {offsets = [0, 0], sizes = [8, 16], strides = [1, 1]} : vector<8x32xf32> to vector<8x16xf32>
    %5 = vector.extract_strided_slice %1 {offsets = [0, 16], sizes = [8, 16], strides = [1, 1]} : vector<8x32xf32> to vector<8x16xf32>
    %6 = arith.mulf %4, %2 : vector<8x16xf32>
    %7 = arith.mulf %5, %3 : vector<8x16xf32>
    %8 = arith.subf %6, %7 : vector<8x16xf32>
    %9 = arith.mulf %4, %3 : vector<8x16xf32>
    %10 = arith.mulf %5, %2 : vector<8x16xf32>
    %11 = arith.addf %9, %10 : vector<8x16xf32>
    %12 = tpu.concatenate %8, %11 in 1 : vector<8x16xf32>, vector<8x16xf32> -> vector<8x32xf32>
    %c0_6 = arith.constant 0 : index
    %c0_7 = arith.constant 0 : index
    %c0_8 = arith.constant 0 : index
    %13 = vector.load %arg5[%c0_6, %c0_7, %c0_8] : memref<1x8x32xf32, #tpu.memory_space<vmem>>, vector<1x8x32xf32>
    %14 = vector.shape_cast %13 : vector<1x8x32xf32> to vector<8x32xf32>
    %15 = vector.shape_cast %12 : vector<8x32xf32> to vector<1x8x32xf32>
    tpu.vector_store %arg5[%c0_6, %c0_7, %c0_8], %15 {strides = array<i32>} : memref<1x8x32xf32, #tpu.memory_space<vmem>>, vector<1x8x32xf32>,
    return
  }
  func.func @transform_0(%arg0: i32, %arg1: i32) -> (i32, i32, i32) {
    %c0_i32 = arith.constant 0 : i32
    %c0_i32_0 = arith.constant 0 : i32
    return %arg0, %arg1, %c0_i32 : i32, i32, i32
  }
  func.func @transform_1(%arg0: i32, %arg1: i32) -> (i32, i32) {
    %c0_i32 = arith.constant 0 : i32
    %c0_i32_0 = arith.constant 0 : i32
    return %arg1, %c0_i32 : i32, i32
  }
  func.func @transform_2(%arg0: i32, %arg1: i32) -> (i32, i32) {
    %c0_i32 = arith.constant 0 : i32
    %c0_i32_0 = arith.constant 0 : i32
    return %arg1, %c0_i32 : i32, i32
  }
  func.func @transform_3(%arg0: i32, %arg1: i32) -> (i32, i32, i32) {
    %c0_i32 = arith.constant 0 : i32
    %c0_i32_0 = arith.constant 0 : i32
    return %arg0, %arg1, %c0_i32 : i32, i32, i32
  }
}

</mosaic_0001>

<bundles_post_ra>
// kernel: tpu_custom_call.1
= control target key start
LH: loop header
LB: loop body
LE: loop exit
PB: predicated region body
PF: predicated region fallthrough
CT: control target
= control target key end

     0   :  { %s1088_s0 = inlined_call_operand.hbm [shape: f32[2,16,32], index: 0, kind: input, shape index: {}]   ;;  %s1089_s1 = inlined_call_operand.hbm [shape: f32[16,16], index: 1, kind: input, shape index: {}]   ;;  %s1090_s2 = inlined_call_operand.hbm [shape: f32[16,16], index: 2, kind: input, shape index: {}]   ;;  %s1091_s3 = inlined_call_operand.hbm [shape: f32[2,16,32], index: 3, kind: output, shape index: {}]  }
   0x1   :  { %1101 = sst [smem:[#allocation21_spill]] %s1089_s1 }
   0x2   :  { %1102 = sst [smem:[#allocation22_spill]] %s1090_s2 }
   0x3   :  { %1103 = sst [smem:[#allocation23_spill]] %s1091_s3 }
   0x4   :  { %8 = vsyncpa [#allocation3], 0 }
   0x5   :  { %10 = vsyncpa [#allocation3 + $0x1], 0 }
   0x6   :  { %11 = vsyncpa [#allocation6], 0 }
   0x7   :  { %13 = vsyncpa [#allocation6 + $0x1], 0 }
   0x8   :  { %14 = vsyncpa [#allocation4], 0 }
   0x9   :  { %16 = vsyncpa [#allocation4 + $0x1], 0  ;;  %s835_s12 = smov 0   ;;  %s837_s13 = smov 0  }
   0xa   :  { %s839_s14 = smov 0   ;;  %s841_s15 = smov 0  }
   0xb   :  { %s843_s16 = smov 0   ;;  %s845_s17 = smov 0  }
   0xc   :  { %s847_s18 = smov 0   ;;  %s849_s19 = smov 0  }
   0xd   :  { %s851_s20 = smov 0   ;;  %s853_s21 = smov 0  }
   0xe   :  { %s855_s22 = smov 0  }
   0xf LB: > { %1104 = sst [smem:[#allocation12_spill]] %s779_s14  ;;  %s889_s23 = sadd.s32 4294967295, %s811_s22   ;;  %s811_s22 = sphi %s855_s22, %s22_s22   ;;  %s807_s21 = sphi %s853_s21, %s1134_s21   ;;  %s803_s20 = sphi %s851_s20, %s1142_s20   ;;  %s799_s19 = sphi %s849_s19, %s1132_s19   ;;  %s795_s18 = sphi %s847_s18, %s1141_s18   ;;  %s791_s17 = sphi %s845_s17, %s1140_s17   ;;  %s787_s16 = sphi %s843_s16, %s1139_s16   ;;  %s783_s15 = sphi %s841_s15, %s1138_s15   ;;  %s779_s14 = sphi %s839_s14, %s1137_s14   ;;  %s775_s13 = sphi %s837_s13, %s1136_s13   ;;  %s771_s12 = sphi %s835_s12, %s1135_s12  }
  0x10   : > { %1105 = sst [smem:[#allocation13_spill]] %s783_s15  ;;  %s31_s24 = sadd.s32 1, %s803_s20 }
  0x11   : > { %1106 = sst [smem:[#allocation14_spill]] %s795_s18  ;;  %p892_p0 = scmp.ge.s32.totalorder %s31_s24, 2 }
  0x12   : > { %1107 = sst [smem:[#allocation15_spill]] %s807_s21  ;;  %p51_p1 = scmp.eq.s32.totalorder %s811_s22, 0 }
  0x13   : > { %p57_p2 = scmp.eq.s32.totalorder %s889_s23, 0  ;;  %s69_s26 = sadd.s32 1, %s779_s14 }
  0x14   : > { %s1144_s24 = smov (%p892_p0, %s31_s24), 0  ;;  %p76_p3 = scmp.ne.s32.totalorder %s779_s14, %s775_s13 }
  0x15   : > { %1109 = sst [smem:[#allocation16_spill]] %s1144_s24  ;;  %p82_p4 = scmp.ne.s32.totalorder %s775_s13, %s771_s12 }
  0x16   : > { %s908_s27 = ssub.s32 %s803_s20, %s1144_s24  ;;  %p913_p6 = por %p76_p3, %p51_p1 }
  0x17   : > { %p67_p5 = scmp.eq.s32.totalorder %s908_s27, 0  ;;  %p919_p7 = por %p82_p4, %p57_p2 }
  0x18   : > { %p503_p8 = scmp.lt.s32.totalorder %s811_s22, 4  ;;  %s181_s4 = sand.u32 1, %s811_s22  }
  0x19   : > { %s925_s30 = scalar_select %p67_p5, %s779_s14, %s69_s26  }
  0x1a   : > { %s183_s5 = sand.u32 1, %s779_s14   ;;  %s468_s7 = sshll.u32 %s803_s20, 3 }
  0x1b   : > { %1112 = sst [smem:[#allocation17_spill]] %s925_s30  ;;  %s929_s6 = sshll.u32 %s183_s5, 3 }
  0x1c   : > { %s1113_s1 = sld [smem:[#allocation21_spill]]  ;;  %s185_s11 = scalar_lea.vmem [#allocation5], %s929_s6 }
  0x1d   : > { %s193_s12 = sshll.u32 %s185_s11, 4  ;;  %p940_p9 = pnand %p503_p8, %p913_p6  ;;  %s194_s12 = int_to_ptr.vmem [resolvable:$true] %s193_s12 }
  0x1e   : > { %s1115_s2 = sld [smem:[#allocation22_spill]]  ;;  %p471_p10 = scmp.ge.s32.totalorder %s811_s22, 1 }
  0x1f   : > { %p217_p11 = scmp.lt.s32.totalorder %s811_s22, 5  ;;  %s461_s11 = sadd.s32 4294967294, %s811_s22  }
  0x20   : > { %s34_s8 = sadd.s32 1, %s807_s21  ;;  %p50_p13 = scmp.ne.s32.totalorder %s791_s17, %s787_s16 }
  0x21   : > { %p956_p12 = pnand %p471_p10, %p217_p11  ;;  %s1146_s8 = smov (!%p892_p0, %s34_s8), %s807_s21 }
  0x22   : > { %s189_s10 = scalar_lea.hbm %s1113_s1, %s468_s7  ;;  %p36_p3 = scmp.ge.s32.totalorder %s1146_s8, 2 }
  0x23   : > { %s191_s26 = sshll.u32 %s189_s10, 4  ;;  %s950_s10 = scalar_lea.sflag [#allocation6], %s181_s4  ;;  %s192_s26 = int_to_ptr.hbm [resolvable:$true] %s191_s26 }
  0x24   : > { %s947_s1 = scalar_lea.hbm %s1115_s2, %s468_s7  ;;  %s43_s7 = sadd.s32 1, %s791_s17 }
  0x25   : > { %495 = dma.hbm_to_vmem [thread:$0]  (!%p940_p9), %s192_s26, 128, %s194_s12, %s950_s10  }
  0x26   : > { %p56_p4 = scmp.ne.s32.totalorder %s787_s16, %s783_s15  ;;  %p972_p5 = por %p51_p1, %p50_p13 }
  0x27   : > { %p134_p6 = scmp.eq.s32.totalorder %s889_s23, 3  ;;  %s1148_s8 = smov (%p36_p3, %s1146_s8), 0 }
  0x28   : > { %1118 = sst [smem:[#allocation18_spill]] %s1148_s8  ;;  %p981_p10 = por %p57_p2, %p56_p4 }
  0x29   : > { %p985_p0 = por %p134_p6, %p50_p13  ;;  %s38_s26 = ssub.s32 %s807_s21, %s1148_s8 }
  0x2a   : > { %p140_p1 = scmp.eq.s32.totalorder %s461_s11, 3  ;;  %s40_s9 = sor.u32 %s908_s27, %s38_s26 }
  0x2b   : > { %s1120_s12 = scalar_select %p985_p0, 1, 0 }
  0x2c   : > { %s160_s2 = sand.u32 1, %s791_s17   ;;  %p41_p11 = scmp.eq.s32.totalorder %s40_s9, 0 }
  0x2d   : > { %1121 = sst [smem:[#allocation19_spill]] %s1120_s12  ;;  %p993_p3 = por %p140_p1, %p56_p4 }
  0x2e   : > { %s464_s30 = sshll.u32 %s160_s2, 3  ;;  %s465_s15 = sshll.u32 %s807_s21, 1 }
  0x2f   : > { %s1122_s24 = scalar_select %p993_p3, 1, 0 }
  0x30   : > { %s998_s14 = scalar_select %p41_p11, %s791_s17, %s43_s7  }
  0x31   : > { %1123 = sst [smem:[#allocation20_spill]] %s1122_s24  ;;  %s168_s3 = sadd.s32 %s803_s20, %s465_s15 }
  0x32   : > { %s164_s12 = scalar_lea.vmem [#allocation2], %s464_s30  ;;  %s466_s8 = sshll.u32 %s168_s3, 3 }
  0x33   : > { %s174_s18 = sshll.u32 %s164_s12, 4  ;;  %s170_s26 = scalar_lea.hbm %s1088_s0, %s466_s8  ;;  %s175_s18 = int_to_ptr.vmem [resolvable:$true] %s174_s18 }
  0x34   : > { %p490_p2 = pnand %p503_p8, %p972_p5  ;;  %s172_s9 = sshll.u32 %s170_s26, 4  ;;  %s173_s9 = int_to_ptr.hbm [resolvable:$true] %s172_s9 }
  0x35   : > { %s210_s24 = sshll.u32 %s947_s1, 4  ;;  %s161_s7 = scalar_lea.sflag [#allocation3], %s160_s2  ;;  %s211_s24 = int_to_ptr.hbm [resolvable:$true] %s210_s24 }
  0x36   : > { %492 = dma.hbm_to_vmem [thread:$0]  (!%p490_p2), %s173_s9, 128, %s175_s18, %s161_s7  }
  0x37   : > { %s204_s15 = scalar_lea.vmem [#allocation7], %s929_s6  ;;  %221 = sbr.rel (%p956_p12) target bundleno = 395 (0x18b), region = 32 }
  0x38   : > { %s212_s21 = sshll.u32 %s204_s15, 4  ;;  %s1017_s3 = sand.u32 (!%p956_p12), 1, %s787_s16   ;;  %s213_s21 = int_to_ptr.vmem [resolvable:$true] %s212_s21 }
  0x39   : > { %498 = dma.hbm_to_vmem [thread:$0]  (!%p940_p9), %s211_s24, 128, %s213_s21, %s950_s10  }
  0x3a   : > { %s472_s1 = sshll.u32 (!%p956_p12), %s1017_s3, 3  ;;  %s224_s30 = scalar_lea.sflag (!%p956_p12), [#allocation3], %s1017_s3 }
  0x3b   : > { %s227_s2 = scalar_lea.vmem (!%p956_p12), [#allocation2], %s472_s1 }
  0x3c   : > { %758 = dma.done.wait (%p981_p10), %s224_s30, 128  }
  0x3d   : > { %760 = vsyncadd (%p981_p10), %s224_s30, 4294967168  ;;  %s233_s18 = sand.u32 1, %s889_s23   ;;  %s235_s21 = sand.u32 1, %s775_s13  }
  0x3e   : > { %s473_s24 = sshll.u32 %s235_s21, 3  ;;  %s234_s6 = scalar_lea.sflag [#allocation6], %s233_s18 }
  0x3f   : > { %s237_s5 = scalar_lea.vmem [#allocation5], %s473_s24 }
  0x40   : > { %762 = dma.done.wait (%p919_p7), %s234_s6, 256  }
  0x41   : > { %764 = vsyncadd (%p919_p7), %s234_s6, 4294967040  ;;  %v282_v0 = vld [vmem:[%s237_s5] sm:$0xff]  ;;  %s813_s10 = smov 16   ;;  %s247_s28 = scalar_lea.vmem [#allocation7], %s473_s24  ;;  %v281_v2 = vld [vmem:[%s227_s2] sm:$0xff]  ;;  %vm310_vm0 = vcmask 130048  }
  0x42   : > { %297 = vrot.lane.b32.xlu0 %v282_v0, %s813_s10  ;;  %s1124_s8 = sld [smem:[#allocation14_spill]]  ;;  %v283_v1 = vld [vmem:[%s247_s28] sm:$0xff]  ;;  %s814_s23 = smov 112   ;;  %v284_v10 = vmul.f32 %v282_v0, %v281_v2  ;;  %vm312_vm1 = vcmask 261120  }
  0x43   : > { %v295_v7 = vmul.f32 %v283_v1, %v281_v2  ;;  %s477_s29 = sshll.u32 %s799_s19, 1  ;;  %s1125_s27 = sld [smem:[#allocation23_spill]] }
  0x44   : > { %s280_s7 = scalar_lea.vmem [#allocation8], %s472_s1  ;;  %s315_s19 = scalar_lea.sflag [#allocation4], %s1017_s3 }
  0x45   : > { %s329_s15 = sshll.u32 %s280_s7, 4  ;;  %s330_s15 = int_to_ptr.vmem [resolvable:$true] %s329_s15 }
  0x48   : > { %s325_s4 = sadd.s32 %s1124_s8, %s477_s29 }
  0x49   : > { %s478_s25 = sshll.u32 %s325_s4, 3  ;;  %s705_s1 = scalar_lea.hbm %s1125_s27, 32 }
  0x4a   : > { %286 = vrot.lane.b32.xlu0 %v283_v1, %s813_s10  ;;  %s327_s26 = scalar_lea.hbm %s1125_s27, %s478_s25 }
  0x4b   : > { %s331_s30 = sshll.u32 %s327_s26, 4  ;;  %s332_s30 = int_to_ptr.hbm [resolvable:$true] %s331_s30 }
  0x4c   : > { %s699_s2 = sshra.s32 %s332_s30, 4  ;;  %s700_s2 = int_to_ptr.hbm [resolvable:$true] %s699_s2 }
  0x4d   : > { %s701_s18 = scalar_lea.hbm %s700_s2, 8  ;;  %p706_p12 = scmp.lt.s32.totalorder %s700_s2, %s1125_s27 }
  0x4e   : > { %p702_p7 = scmp.ne.s32.totalorder %s700_s2, %s701_s18  ;;  %p707_p13 = scmp.lt.s32.totalorder %s705_s1, %s701_s18 }
  0x50   : > { %p703_p8 = pnand %p702_p7, %p985_p0  ;;  %p708_p4 = por %p707_p13, %p706_p12 }
  0x52   : > { %p704_p9 = pneg %p703_p8 }
  0x54   : > { %p709_p5 = pnand %p708_p4, %p704_p9 }
  0xb4   : > { %v298_v3 = vpop.permute.xlu0 %297 }
  0xb5   : > { %v300_v4 = vmul.f32 %v298_v3, %v281_v2 }
  0xb7   : > { %302 = vrot.lane.b32.xlu1 %v300_v4, %s814_s23 }
  0xbc   : > { %v287_v5 = vpop.permute.xlu0 %286 }
  0xbd   : > { %v289_v6 = vmul.f32 %v287_v5, %v281_v2 }
  0xbf   : > { %291 = vrot.lane.b32.xlu1 %v289_v6, %s814_s23 }
 0x129   : > { %v303_v8 = vpop.permute.xlu1 %302 }
 0x12a   : > { %v305_v9 = vadd.f32 %v303_v8, %v295_v7 }
 0x12c   : > { %307 = vrot.lane.b32.xlu2 %v305_v9, %s813_s10 }
 0x131   : > { %v292_v11 = vpop.permute.xlu1 %291 }
 0x132   : > { %v294_v12 = vsub.f32 %v284_v10, %v292_v11 }
 0x186   : > { %v308_v13 = vpop.permute.xlu2 %307 }
 0x187   : > { %v311_v14 = vsel %vm310_vm0, %v294_v12, %v308_v13 }
 0x188   : > { %313 = vst.msk [vmem:[%s280_s7] sm:$0xff] %vm312_vm1, %v311_v14 }
 0x189   : > { %712 = shalt.err (!%p709_p5)
}
 0x18a   : > { %487 = dma.vmem_to_hbm [thread:$0]  (%p985_p0), %s330_s15, 128, %s332_s30, %s315_s19  }
 0x18b PF: > { %s1127_s3 = sld [smem:[#allocation13_spill]]  ;;  %p504_p6 = scmp.ge.s32.totalorder %s811_s22, 2 }
 0x18d   : > { %p500_p10 = pnand %p504_p6, %p993_p3 }
 0x18f   : > { %p501_p1 = pneg %p500_p10 }
 0x191   : > { %s343_s28 = sand.u32 1, %s1127_s3  }
 0x192   : > { %s344_s8 = scalar_lea.sflag [#allocation4], %s343_s28 }
 0x193   : > { %766 = dma.done.wait (%p501_p1), %s344_s8, 128  }
 0x194   : > { %768 = vsyncadd (%p501_p1), %s344_s8, 4294967168  ;;  %s22_s22 = sadd.s32 1, %s811_s22   ;;  %s1129_s23 = sld [smem:[#allocation12_spill]] }
 0x195   : > { %p19_p11 = scmp.ge.s32.totalorder %s22_s22, 6   ;;  %s1130_s29 = sld [smem:[#allocation17_spill]] }
 0x196   : > { %s1131_s4 = smov %s998_s14  ;;  %s1132_s19 = sld [smem:[#allocation15_spill]] }
 0x197   : > { %s1133_s25 = sld [smem:[#allocation16_spill]]  ;;  %s1135_s12 = smov %s775_s13 }
 0x198   : > { %s1134_s21 = sld [smem:[#allocation18_spill]]  ;;  %s1138_s15 = smov %s787_s16 }
 0x199   : > { %s1139_s16 = smov %s791_s17  ;;  %s1140_s17 = smov %s1131_s4 }
 0x19a   : > { %s1136_s13 = smov %s1129_s23  ;;  %s1141_s18 = smov %s803_s20 }
 0x19b   : > { %s1137_s14 = smov %s1130_s29  ;;  %21 = sbr.rel (!%p19_p11) target bundleno = 15 (0xf), region = 101 }
 0x19d   : > { %s1142_s20 = smov %s1133_s25 }
 0x1a0   :  { %350 = vsyncpa [#allocation3], 1 }
 0x1a1   :  { %352 = vsyncpa [#allocation3 + $0x1], 1 }
 0x1a2   :  { %353 = vsyncpa [#allocation6], 1 }
 0x1a3   :  { %355 = vsyncpa [#allocation6 + $0x1], 1 }
 0x1a4   :  { %356 = vsyncpa [#allocation4], 1 }
 0x1a5   :  { %358 = vsyncpa [#allocation4 + $0x1], 1 }

</bundles_post_ra>
